<compile_context>
chip_gen: v7x
topology: tpu7x:2x2x1
jax: 0.10.0
libtpu: 0.0.40
codegen_flags: <defaults>
</compile_context>

<pallas_src>
import functools

import jax
import jax.numpy as jnp
from jax.experimental import pallas as pl
from jax.experimental.pallas import tpu as pltpu


def _pad_width_kernel(x_ref, o_ref, *, pad_left, pad_right, w):
    # Width padding: zero only the left/right column bands, then one interior
    # copy.  The interior is written exactly once (no full-canvas zero fill).
    pb, h, _ = o_ref.shape
    if pad_left:
        o_ref[:, :, :pad_left] = jnp.zeros((pb, h, pad_left), o_ref.dtype)
    if pad_right:
        o_ref[:, :, pad_left + w:] = jnp.zeros((pb, h, pad_right), o_ref.dtype)
    o_ref[:, :, pad_left:pad_left + w] = x_ref[...]


def _pad_height_kernel(x_ref, o_ref, *, pad_top, pad_bottom, h):
    # Height padding: top/bottom row strips are sublane-only slices, so both
    # the strip zero-fills and the full-width interior copy are lane-dense
    # (unmasked) stores.
    pb, _, w_out = o_ref.shape
    if pad_top:
        o_ref[:, :pad_top, :] = jnp.zeros((pb, pad_top, w_out), o_ref.dtype)
    if pad_bottom:
        o_ref[:, pad_top + h:, :] = jnp.zeros((pb, pad_bottom, w_out), o_ref.dtype)
    o_ref[:, pad_top:pad_top + h, :] = x_ref[...]


def pad_to_maintain_ar(x, aspect_ratio, *, vmem_budget_bytes=32 * 1024 * 1024):
    """Pallas implementation of PadToMaintainAR.forward for NCHW tensors."""
    n, c, height, width = x.shape  # PIL: size[0]=width, size[1]=height

    current_aspect_ratio = width / height
    target_aspect_ratio = aspect_ratio

    pad_top = pad_bottom = pad_left = pad_right = 0
    if current_aspect_ratio < target_aspect_ratio:
        target_width = int(target_aspect_ratio * height)
        pad_amount_pixels = target_width - width
        pad_left = int(pad_amount_pixels / 2)
        pad_right = int(pad_amount_pixels / 2)
    elif current_aspect_ratio > target_aspect_ratio:
        target_height = int(width / target_aspect_ratio)
        pad_amount_pixels = target_height - height
        pad_top = int(pad_amount_pixels / 2)
        pad_bottom = int(pad_amount_pixels / 2)

    # AR already matches (or truncation gives zero pad): skip the kernel and
    # the full HBM read+write entirely.
    if pad_top == 0 and pad_bottom == 0 and pad_left == 0 and pad_right == 0:
        return x

    h_out = height + pad_top + pad_bottom
    w_out = width + pad_left + pad_right

    # Fuse N and C into one "planes" axis; copy several planes per grid step.
    planes = n * c
    x_flat = x.reshape(planes, height, width)

    itemsize = jnp.dtype(x.dtype).itemsize
    plane_bytes = (height * width + h_out * w_out) * itemsize  # in + out per plane

    # Largest plane block whose double-buffered in+out tiles fit the budget,
    # kept to >=2 grid steps (when possible) so v7x's 2 TCs both get work.
    max_pb = max(1, vmem_budget_bytes // (2 * plane_bytes))
    if planes >= 2:
        max_pb = min(max_pb, planes // 2)
    plane_block = 1
    for d in range(min(max_pb, planes), 0, -1):
        if planes % d == 0:
            plane_block = d
            break

    # Explicit VMEM limit: double-buffered in+out tiles plus headroom.
    # (v5e scoped default is only 16 MiB; v7x physical VMEM is 64 MiB.)
    vmem_limit_bytes = int(
        min(100 * 1024 * 1024,
            max(4 * 1024 * 1024, 2 * plane_block * plane_bytes + (2 << 20)))
    )

    if pad_left or pad_right:
        kernel = functools.partial(
            _pad_width_kernel, pad_left=pad_left, pad_right=pad_right, w=width
        )
    else:
        kernel = functools.partial(
            _pad_height_kernel, pad_top=pad_top, pad_bottom=pad_bottom, h=height
        )

    out_flat = pl.pallas_call(
        kernel,
        out_shape=jax.ShapeDtypeStruct((planes, h_out, w_out), x.dtype),
        grid=(planes // plane_block,),
        # Last two block dims equal the full array dims, so the (8,128)
        # divisibility rule is satisfied by the full-extent clause.
        in_specs=[pl.BlockSpec((plane_block, height, width), lambda i: (i, 0, 0))],
        out_specs=pl.BlockSpec((plane_block, h_out, w_out), lambda i: (i, 0, 0)),
        compiler_params=pltpu.CompilerParams(
            dimension_semantics=("parallel",),
            vmem_limit_bytes=vmem_limit_bytes,
        ),
    )(x_flat)

    return out_flat.reshape(n, c, h_out, w_out)


def _reference(x, aspect_ratio):
    """Pure-JAX reference (jnp.pad) mirroring the PyTorch/PIL semantics."""
    _, _, height, width = x.shape
    cur = width / height
    pt = pb = plft = prt = 0
    if cur < aspect_ratio:
        pad = int(aspect_ratio * height) - width
        plft = prt = int(pad / 2)
    elif cur > aspect_ratio:
        pad = int(width / aspect_ratio) - height
        pt = pb = int(pad / 2)
    return jnp.pad(x, ((0, 0), (0, 0), (pt, pb), (plft, prt)))


if __name__ == "__main__":
    key = jax.random.PRNGKey(0)
    # Small NCHW image batch: batch=2, channels=4, 16x16 spatial.
    x = jax.random.normal(key, (2, 4, 16, 16), dtype=jnp.float32)

    # Width-pad branch: current AR = 1.0 < 2.0 -> pad width 16 -> 32.
    out = jax.block_until_ready(pad_to_maintain_ar(x, 2.0))
    ref = _reference(x, 2.0)
    assert out.shape == ref.shape, (out.shape, ref.shape)
    assert jnp.array_equal(out, ref), "width-pad mismatch vs reference"

    # Height-pad branch: current AR = 1.0 > 0.5 -> pad height 16 -> 32.
    out2 = jax.block_until_ready(pad_to_maintain_ar(x, 0.5))
    assert jnp.array_equal(out2, _reference(x, 0.5)), "height-pad mismatch"

    # No-op branch (short-circuit, no kernel launch).
    out3 = jax.block_until_ready(pad_to_maintain_ar(x, 1.0))
    assert jnp.array_equal(out3, x), "no-op branch mismatch"

    # Odd pad amount (int truncation: pad 3 -> 1 per side), width 16 -> 18.
    out4 = jax.block_until_ready(pad_to_maintain_ar(x, 19.0 / 16.0))
    assert jnp.array_equal(out4, _reference(x, 19.0 / 16.0)), "odd-pad mismatch"

    print("KERNEL_OK")
</pallas_src>

<mosaic_0001>
module attributes {stable_mosaic.version = 11 : i64} {
  func.func @_pad_width_kernel(%arg0: i32, %arg1: memref<4x16x16xf32, #tpu.memory_space<vmem>>, %arg2: memref<4x16x32xf32, #tpu.memory_space<vmem>>) attributes {dimension_semantics = [#tpu.dimension_semantics<parallel>], iteration_bounds = array<i64: 2>, scalar_prefetch = 0 : i64, scratch_operands = 0 : i64, tpu.core_type = #tpu.core_type<tc>, window_params = [{transform_indices = @transform_0, window_bounds = array<i64: 4, 16, 16>}, {transform_indices = @transform_1, window_bounds = array<i64: 4, 16, 32>}]} {
    %cst = arith.constant 0.000000e+00 : f32
    %0 = vector.broadcast %cst : f32 to vector<4x16x8xf32>
    %c0 = arith.constant 0 : index
    %c0_0 = arith.constant 0 : index
    %c0_1 = arith.constant 0 : index
    %1 = vector.load %arg2[%c0, %c0_0, %c0_1] : memref<4x16x32xf32, #tpu.memory_space<vmem>>, vector<4x16x8xf32>
    tpu.vector_store %arg2[%c0, %c0_0, %c0_1], %0 {strides = array<i32>} : memref<4x16x32xf32, #tpu.memory_space<vmem>>, vector<4x16x8xf32>,
    %cst_2 = arith.constant 0.000000e+00 : f32
    %2 = vector.broadcast %cst_2 : f32 to vector<4x16x8xf32>
    %c0_3 = arith.constant 0 : index
    %c0_4 = arith.constant 0 : index
    %c24 = arith.constant 24 : index
    %3 = vector.load %arg2[%c0_3, %c0_4, %c24] : memref<4x16x32xf32, #tpu.memory_space<vmem>>, vector<4x16x8xf32>
    tpu.vector_store %arg2[%c0_3, %c0_4, %c24], %2 {strides = array<i32>} : memref<4x16x32xf32, #tpu.memory_space<vmem>>, vector<4x16x8xf32>,
    %c0_5 = arith.constant 0 : index
    %c0_6 = arith.constant 0 : index
    %c0_7 = arith.constant 0 : index
    %4 = vector.load %arg1[%c0_5, %c0_6, %c0_7] : memref<4x16x16xf32, #tpu.memory_space<vmem>>, vector<4x16x16xf32>
    %c0_8 = arith.constant 0 : index
    %c0_9 = arith.constant 0 : index
    %c8 = arith.constant 8 : index
    %5 = vector.load %arg2[%c0_8, %c0_9, %c8] : memref<4x16x32xf32, #tpu.memory_space<vmem>>, vector<4x16x16xf32>
    tpu.vector_store %arg2[%c0_8, %c0_9, %c8], %4 {strides = array<i32>} : memref<4x16x32xf32, #tpu.memory_space<vmem>>, vector<4x16x16xf32>,
    return
  }
  func.func @transform_0(%arg0: i32) -> (i32, i32, i32) {
    %c0_i32 = arith.constant 0 : i32
    %c0_i32_0 = arith.constant 0 : i32
    %c0_i32_1 = arith.constant 0 : i32
    return %arg0, %c0_i32, %c0_i32_0 : i32, i32, i32
  }
  func.func @transform_1(%arg0: i32) -> (i32, i32, i32) {
    %c0_i32 = arith.constant 0 : i32
    %c0_i32_0 = arith.constant 0 : i32
    %c0_i32_1 = arith.constant 0 : i32
    return %arg0, %c0_i32, %c0_i32_0 : i32, i32, i32
  }
}

</mosaic_0001>

<bundles_post_ra>
// kernel: tpu_custom_call.1
= control target key start
LH: loop header
LB: loop body
LE: loop exit
PB: predicated region body
PF: predicated region fallthrough
CT: control target
= control target key end

     0   :  { %6 = vsyncpa [#allocation3], 0  ;;  %s703_s0 = inlined_call_operand.hbm [shape: f32[8,16,16], index: 0, kind: input, shape index: {}]   ;;  %s704_s1 = inlined_call_operand.hbm [shape: f32[8,16,32], index: 1, kind: output, shape index: {}]  }
   0x1   :  { %8 = vsyncpa [#allocation3 + $0x1], 0 }
   0x2   :  { %9 = vsyncpa [#allocation4], 0 }
   0x3   :  { %11 = vsyncpa [#allocation4 + $0x1], 0  ;;  %s479_s6 = smov 0   ;;  %s481_s7 = smov 0  }
   0x4   :  { %s483_s8 = smov 0   ;;  %s485_s9 = smov 0  }
   0x5 LB: > { %s500_s10 = sadd.s32 4294967295, %s460_s9   ;;  %s293_s11 = sadd.s32 4294967294, %s460_s9   ;;  %s460_s9 = sphi %s485_s9, %s717_s9   ;;  %s456_s8 = sphi %s483_s8, %s716_s8   ;;  %s452_s7 = sphi %s481_s7, %s715_s7   ;;  %s448_s6 = sphi %s479_s6, %s714_s6  }
   0x6   : > { %s504_s12 = sadd.s32 1, %s460_s9   ;;  %s24_s13 = sadd.s32 1, %s456_s8 }
   0x7   : > { %s21_s14 = ssub.s32 %s460_s9, %s504_s12  ;;  %p31_p0 = scmp.ne.s32.totalorder %s456_s8, %s452_s7 }
   0x8   : > { %p22_p1 = scmp.eq.s32.totalorder %s21_s14, 0  ;;  %p32_p2 = scmp.eq.s32.totalorder %s460_s9, 0 }
   0x9   : > { %p37_p3 = scmp.ne.s32.totalorder %s452_s7, %s448_s6  ;;  %p38_p4 = scmp.eq.s32.totalorder %s500_s10, 0 }
   0xa   : > { %s516_s15 = scalar_select %p22_p1, %s456_s8, %s24_s13  }
   0xb   : > { %p518_p5 = por %p32_p2, %p31_p0  ;;  %p522_p6 = por %p38_p4, %p37_p3 }
   0xc   : > { %p61_p7 = scmp.eq.s32.totalorder %s500_s10, 1  ;;  %p67_p8 = scmp.eq.s32.totalorder %s293_s11, 1 }
   0xd   : > { %p325_p10 = scmp.lt.s32.totalorder %s460_s9, 2  ;;  %s87_s20 = sand.u32 1, %s456_s8  }
   0xe   : > { %p529_p11 = por %p61_p7, %p31_p0  ;;  %p533_p12 = por %p67_p8, %p37_p3 }
   0xf   : > { %s310_s21 = sshll.u32 %s460_s9, 10  ;;  %s296_s22 = sshll.u32 %s87_s20, 6 }
  0x10   : > { %s708_s18 = scalar_select %p529_p11, 1, 0 }
  0x11   : > { %s709_s19 = scalar_select %p533_p12, 1, 0 }
  0x12   : > { %s542_s25 = scalar_lea.hbm %s703_s0, %s310_s21  ;;  %s91_s26 = scalar_lea.vmem [#allocation2], %s296_s22 }
  0x13   : > { %s99_s27 = sshll.u32 %s91_s26, 4  ;;  %p546_p13 = pnand %p325_p10, %p518_p5  ;;  %s550_s27 = int_to_ptr.vmem [resolvable:$true] %s99_s27 }
  0x14   : > { %s552_s29 = scalar_lea.sflag [#allocation3], %s87_s20  ;;  %s364_s30 = scalar_lea.hbm %s542_s25, 1024 }
  0x15   : > { %p365_p0 = scmp.ne.s32.totalorder %s542_s25, %s364_s30  ;;  %p366_p1 = pneg %p546_p13 }
  0x16   : > { %s369_s4 = scalar_lea.hbm %s703_s0, 2048  ;;  %p370_p4 = scmp.lt.u32.totalorder %s542_s25, %s703_s0 }
  0x17   : > { %p367_p2 = pnand %p366_p1, %p365_p0  ;;  %p371_p5 = scmp.lt.u32.totalorder %s369_s4, %s364_s30 }
  0x18   : > { %p373_p8 = scmp.lt.u32.totalorder %s364_s30, %s542_s25 }
  0x19   : > { %p368_p3 = pneg %p367_p2  ;;  %p372_p7 = por %p371_p5, %p370_p4 }
  0x1b   : > { %p374_p10 = por %p373_p8, %p372_p7 }
  0x1d   : > { %p375_p9 = pnand %p374_p10, %p368_p3 }
  0x1f   : > { %378 = shalt.err (!%p375_p9)
}
  0x20   : > { %s379_s13 = scalar_lea.vmem %s550_s27, 1024  ;;  %s462_s14 = smov [#allocation2]  }
  0x21   : > { %p380_p0 = scmp.ne.s32.totalorder %s550_s27, %s379_s13  ;;  %s384_s16 = sshll.u32 %s462_s14, 4  ;;  %s385_s16 = int_to_ptr.vmem [resolvable:$false] %s384_s16 }
  0x22   : > { %s386_s20 = scalar_lea.vmem %s385_s16, 2048  ;;  %p387_p11 = scmp.lt.s32.totalorder %s550_s27, %s385_s16 }
  0x23   : > { %p382_p2 = pnand %p380_p0, %p366_p1  ;;  %p388_p4 = scmp.lt.s32.totalorder %s386_s20, %s379_s13 }
  0x25   : > { %p383_p12 = pneg %p382_p2  ;;  %p389_p5 = por %p388_p4, %p387_p11 }
  0x27   : > { %p390_p7 = pnand %p389_p5, %p383_p12 }
  0x29   : > { %393 = shalt.err (!%p390_p7)
}
  0x2a   : > { %s463_s21 = smov 128   ;;  %s464_s22 = smov 8  }
  0x2b   : > { %320 = dma.hbm_to_vmem [thread:$0]  (!%p546_p13), %s542_s25, 1024, %s550_s27, %s552_s29, %s463_s21, %s463_s21, %s464_s22  }
  0x2c   : > { %p300_p9 = scmp.ge.s32.totalorder %s460_s9, 1  ;;  %p107_p1 = scmp.lt.s32.totalorder %s460_s9, 3 }
  0x2e   : > { %p108_p3 = pnand %p300_p9, %p107_p1 }
  0x2f   : > { %s583_s23 = sand.u32 (!%p108_p3), 1, %s452_s7  }
  0x30   : > { %111 = sbr.rel (%p108_p3) target bundleno = 200 (0xc8), region = 24  ;;  %s301_s24 = sshll.u32 (!%p108_p3), %s583_s23, 6 }
  0x31   : > { %s114_s26 = scalar_lea.sflag (!%p108_p3), [#allocation3], %s583_s23  ;;  %s587_s30 = scalar_lea.vmem (!%p108_p3), [#allocation2], %s301_s24 }
  0x37   : > { %439 = dma.done.wait (%p522_p6), %s114_s26, 1024  }
  0x38   : > { %441 = vsyncadd (%p522_p6), %s114_s26, 4294966272  ;;  %vm138_vm0 = vcmask 64512   ;;  %vm147_vm1 = vcmask 261312   ;;  %s593_s25 = scalar_lea.vmem [#allocation5], %s301_s24  ;;  %v465_v0 = vmov 0.0   ;;  %v158_v1 = vld [vmem:[%s587_s30 + $0x10] sm:$0xff] }
  0x39   : > { %141 = vst.msk [vmem:[%s593_s25 + $0x10] sm:$0xff] %vm138_vm0, %v465_v0  ;;  %139 = vst.msk [vmem:[%s593_s25] sm:$0xff] %vm138_vm0, %v465_v0  ;;  %v156_v2 = vld [vmem:[%s587_s30] sm:$0xff]  ;;  %s466_s17 = smov 8   ;;  %v159_v3 = vld [vmem:[%s587_s30 + $0x18] sm:$0xff]  ;;  %vm196_vm2 = vcmask 195648  }
  0x3a   : > { %140 = vst.msk [vmem:[%s593_s25 + $0x8] sm:$0xff] %vm138_vm0, %v465_v0  ;;  %142 = vst.msk [vmem:[%s593_s25 + $0x18] sm:$0xff] %vm138_vm0, %v465_v0  ;;  %176 = vrot.lane.b32.xlu1 %v158_v1, %s466_s17  ;;  %172 = vrot.lane.b32.xlu0 %v156_v2, %s466_s17  ;;  %s312_s27 = sshll.u32 %s500_s10, 10  ;;  %s220_s28 = sshll.u32 %s593_s25, 4  ;;  %s654_s28 = int_to_ptr.vmem [resolvable:$true] %s220_s28 }
  0x3b   : > { %143 = vst.msk [vmem:[%s593_s25 + $0x20] sm:$0xff] %vm138_vm0, %v465_v0  ;;  %144 = vst.msk [vmem:[%s593_s25 + $0x28] sm:$0xff] %vm138_vm0, %v465_v0  ;;  %v157_v4 = vld [vmem:[%s587_s30 + $0x8] sm:$0xff]  ;;  %v160_v6 = vld [vmem:[%s587_s30 + $0x20] sm:$0xff]  ;;  %s652_s3 = scalar_lea.hbm %s704_s1, %s312_s27  ;;  %s206_s10 = scalar_lea.sflag [#allocation4], %s583_s23 }
  0x3c   : > { %145 = vst.msk [vmem:[%s593_s25 + $0x30] sm:$0xff] %vm138_vm0, %v465_v0  ;;  %146 = vst.msk [vmem:[%s593_s25 + $0x38] sm:$0xff] %vm138_vm0, %v465_v0  ;;  %v161_v5 = vld [vmem:[%s587_s30 + $0x28] sm:$0xff]  ;;  %v163_v7 = vld [vmem:[%s587_s30 + $0x38] sm:$0xff]  ;;  %s394_s4 = scalar_lea.vmem %s654_s28, 1024  ;;  %p711_p11 = scmp.ne.s32.totalorder %s708_s18, 0 }
  0x3d   : > { %150 = vst.msk [vmem:[%s593_s25 + $0x10] sm:$0xff] %vm147_vm1, %v465_v0  ;;  %148 = vst.msk [vmem:[%s593_s25] sm:$0xff] %vm147_vm1, %v465_v0  ;;  %v162_v8 = vld [vmem:[%s587_s30 + $0x30] sm:$0xff]  ;;  %p395_p6 = scmp.ne.s32.totalorder %s654_s28, %s394_s4  ;;  %s467_s5 = smov [#allocation5]  }
  0x3e   : > { %149 = vst.msk [vmem:[%s593_s25 + $0x8] sm:$0xff] %vm147_vm1, %v465_v0  ;;  %151 = vst.msk [vmem:[%s593_s25 + $0x18] sm:$0xff] %vm147_vm1, %v465_v0  ;;  %178 = vrot.lane.b32.xlu1 %v159_v3, %s466_s17  ;;  %174 = vrot.lane.b32.xlu0 %v157_v4, %s466_s17  ;;  %s398_s11 = sshll.u32 %s467_s5, 4  ;;  %s399_s11 = int_to_ptr.vmem [resolvable:$false] %s398_s11 }
  0x3f   : > { %152 = vst.msk [vmem:[%s593_s25 + $0x20] sm:$0xff] %vm147_vm1, %v465_v0  ;;  %153 = vst.msk [vmem:[%s593_s25 + $0x28] sm:$0xff] %vm147_vm1, %v465_v0  ;;  %p396_p12 = pnand %p395_p6, %p711_p11  ;;  %s400_s13 = scalar_lea.vmem %s399_s11, 2048 }
  0x40   : > { %154 = vst.msk [vmem:[%s593_s25 + $0x30] sm:$0xff] %vm147_vm1, %v465_v0  ;;  %155 = vst.msk [vmem:[%s593_s25 + $0x38] sm:$0xff] %vm147_vm1, %v465_v0  ;;  %p401_p8 = scmp.lt.s32.totalorder %s654_s28, %s399_s11  ;;  %p402_p10 = scmp.lt.s32.totalorder %s400_s13, %s394_s4 }
  0x41   : > { %p397_p13 = pneg %p396_p12 }
  0x42   : > { %182 = vrot.lane.b32.xlu1 %v161_v5, %s466_s17  ;;  %180 = vrot.lane.b32.xlu0 %v160_v6, %s466_s17  ;;  %p403_p0 = por %p402_p10, %p401_p8 }
  0x44   : > { %p404_p2 = pnand %p403_p0, %p397_p13 }
  0x46   : > { %186 = vrot.lane.b32.xlu1 %v163_v7, %s466_s17  ;;  %184 = vrot.lane.b32.xlu0 %v162_v8, %s466_s17 }
  0xac   : > { %v177_v9 = vpop.permute.xlu1 %176  ;;  %v173_v10 = vpop.permute.xlu0 %172 }
  0xad   : > { %199 = vst.msk [vmem:[%s593_s25 + $0x10] sm:$0xff] %vm196_vm2, %v177_v9  ;;  %197 = vst.msk [vmem:[%s593_s25] sm:$0xff] %vm196_vm2, %v173_v10 }
  0xb0   : > { %v179_v11 = vpop.permute.xlu1 %178  ;;  %v175_v12 = vpop.permute.xlu0 %174 }
  0xb1   : > { %200 = vst.msk [vmem:[%s593_s25 + $0x18] sm:$0xff] %vm196_vm2, %v179_v11  ;;  %198 = vst.msk [vmem:[%s593_s25 + $0x8] sm:$0xff] %vm196_vm2, %v175_v12 }
  0xb4   : > { %v183_v13 = vpop.permute.xlu1 %182  ;;  %v181_v14 = vpop.permute.xlu0 %180 }
  0xb5   : > { %202 = vst.msk [vmem:[%s593_s25 + $0x28] sm:$0xff] %vm196_vm2, %v183_v13  ;;  %201 = vst.msk [vmem:[%s593_s25 + $0x20] sm:$0xff] %vm196_vm2, %v181_v14 }
  0xb8   : > { %v187_v15 = vpop.permute.xlu1 %186  ;;  %v185_v16 = vpop.permute.xlu0 %184 }
  0xb9   : > { %204 = vst.msk [vmem:[%s593_s25 + $0x38] sm:$0xff] %vm196_vm2, %v187_v15  ;;  %203 = vst.msk [vmem:[%s593_s25 + $0x30] sm:$0xff] %vm196_vm2, %v185_v16 }
  0xba   : > { %407 = shalt.err (!%p404_p2)
}
  0xbb   : > { %s408_s14 = scalar_lea.hbm %s652_s3, 1024  ;;  %s412_s21 = scalar_lea.hbm %s704_s1, 2048 }
  0xbc   : > { %p409_p4 = scmp.ne.s32.totalorder %s652_s3, %s408_s14  ;;  %p413_p9 = scmp.lt.u32.totalorder %s652_s3, %s704_s1 }
  0xbd   : > { %p414_p1 = scmp.lt.u32.totalorder %s412_s21, %s408_s14  ;;  %p416_p6 = scmp.lt.u32.totalorder %s408_s14, %s652_s3 }
  0xbe   : > { %p410_p5 = pnand %p409_p4, %p711_p11 }
  0xbf   : > { %p415_p3 = por %p414_p1, %p413_p9 }
  0xc0   : > { %p411_p7 = pneg %p410_p5 }
  0xc1   : > { %p417_p12 = por %p416_p6, %p415_p3 }
  0xc3   : > { %p418_p13 = pnand %p417_p12, %p411_p7 }
  0xc5   : > { %421 = shalt.err (!%p418_p13)
}
  0xc6   : > { %s468_s26 = smov 128  }
  0xc7   : > { %315 = dma.vmem_to_hbm [thread:$0]  (%p711_p11), %s654_s28, 1024, %s652_s3, %s206_s10, %s468_s26, %s468_s26, %s466_s17  }
  0xc8 PF: > { %s235_s30 = sand.u32 1, %s448_s6   ;;  %p712_p8 = scmp.ne.s32.totalorder %s709_s19, 0 }
  0xc9   : > { %p713_p10 = scmp.ge.s32.totalorder %s460_s9, 2  ;;  %s236_s25 = scalar_lea.sflag [#allocation4], %s235_s30 }
  0xcb   : > { %p322_p0 = pnand %p713_p10, %p712_p8 }
  0xcd   : > { %443 = dma.done.wait (!%p322_p0), %s236_s25, 1024  }
  0xce   : > { %445 = vsyncadd (!%p322_p0), %s236_s25, 4294966272  ;;  %p14_p2 = scmp.ge.s32.totalorder %s504_s12, 4   ;;  %s714_s6 = smov %s452_s7 }
  0xcf   : > { %s715_s7 = smov %s456_s8  ;;  %s716_s8 = smov %s516_s15 }
  0xd0   : > { %s717_s9 = smov %s504_s12  ;;  %16 = sbr.rel (!%p14_p2) target bundleno = 5 (0x5), region = 69 }
  0xd7   :  { %241 = vsyncpa [#allocation3], 1 }
  0xd8   :  { %243 = vsyncpa [#allocation3 + $0x1], 1 }
  0xd9   :  { %244 = vsyncpa [#allocation4], 1 }
  0xda   :  { %246 = vsyncpa [#allocation4 + $0x1], 1 }

</bundles_post_ra>
